<compile_context>
chip_gen: v5e
topology: v5e:2x2
jax: 0.10.0
libtpu: 0.0.40
codegen_flags: <defaults>
</compile_context>

<pallas_src>
import math
import functools

import jax
import jax.numpy as jnp
from jax.experimental import pallas as pl
from jax.experimental.pallas import tpu as pltpu


def lam_mha_kernel(e1_ref, probs_ref, maskb_ref,
                   wqvT_ref, wkT_ref, woT_ref,
                   bqv_ref, bk_ref, bo_ref,
                   o_ref, *, num_heads, head_dim, block_b, seq_len):
    """One grid step = `block_b` batch rows.

    e1:    (Bt, L, D)  bf16  query / value source embeddings
    probs: (Bt, L, 1)  f32   per-token scale; key source = e1 * probs
    maskb: (Bt, 1, L)  f32   additive key-padding bias (0.0 or -1e30)
    wqvT:  (D, 2D)     bf16  [scale*Wq^T | Wv^T]  (1/sqrt(dh) folded in)
    wkT:   (D, D)      bf16  Wk^T
    woT:   (D, D)      bf16  Wo^T
    biases f32; output f32.
    """
    D = num_heads * head_dim
    Bt, L = block_b, seq_len

    e1_3 = e1_ref[...]                                          # (Bt, L, D) bf16
    # Key source = prob-scaled embeddings: one VPU multiply instead of a
    # second (B, L, D) tensor streamed from HBM.
    e2_3 = (e1_3.astype(jnp.float32) * probs_ref[...]).astype(jnp.bfloat16)

    e1_2 = e1_3.reshape(Bt * L, D)
    e2_2 = e2_3.reshape(Bt * L, D)

    # In-projections: fused Q/V from e1, K from e2.  bf16 MXU, f32 accumulate.
    qv = jnp.dot(e1_2, wqvT_ref[...], preferred_element_type=jnp.float32) + bqv_ref[...]
    k = jnp.dot(e2_2, wkT_ref[...], preferred_element_type=jnp.float32) + bk_ref[...]

    # 1/sqrt(head_dim) is already folded into Wq^T and bq on the host.
    q3 = qv[:, :D].reshape(Bt, L, D).astype(jnp.bfloat16)
    v3 = qv[:, D:].reshape(Bt, L, D).astype(jnp.bfloat16)
    k3 = k.reshape(Bt, L, D).astype(jnp.bfloat16)

    # Broadcast the key-padding bias once (NOT per head; JAX does not CSE
    # broadcast_in_dim).
    mask_b = jnp.broadcast_to(maskb_ref[...], (Bt, L, L))       # (Bt, L, L) f32

    # Per-head attention (small static unrolled loop; softmax stays in f32 on
    # the VPU/EUP).  Per-head contexts are concatenated; a single full-width
    # matmul applies Wo^T afterwards.
    ctxs = []
    for h in range(num_heads):
        lo = h * head_dim
        qh = q3[:, :, lo:lo + head_dim]                         # (Bt, L, dh) bf16
        kh = k3[:, :, lo:lo + head_dim]
        vh = v3[:, :, lo:lo + head_dim]
        s = jnp.einsum('bqd,bkd->bqk', qh, kh,
                       preferred_element_type=jnp.float32) + mask_b
        s = s - jnp.max(s, axis=-1, keepdims=True)              # stable softmax (f32)
        p = jnp.exp(s)
        p = p * pl.reciprocal(jnp.sum(p, axis=-1, keepdims=True), approx=True)
        ctxs.append(jnp.einsum('bqk,bkd->bqd', p.astype(jnp.bfloat16), vh,
                               preferred_element_type=jnp.float32))

    ctx = jnp.concatenate(ctxs, axis=-1).reshape(Bt * L, D)     # (Bt*L, D) f32

    # Single full-width output projection (K = D fills the MXU), then sigmoid.
    out = jnp.dot(ctx.astype(jnp.bfloat16), woT_ref[...],
                  preferred_element_type=jnp.float32) + bo_ref[...]
    out = jax.nn.sigmoid(out)                                   # f32 VPU/EUP
    o_ref[...] = out.reshape(Bt, L, D).astype(o_ref.dtype)
    # TODO(synk): when D < 128 the (Bt, L, D) stores are lane-masked; a
    # lane-dense (Bt, L*D) output layout needs a minor-dim-merging relayout
    # that the Mosaic reshape lowering does not reliably support yet.


def _estimate_block_vmem(bb, L, D, H):
    """Rough per-step VMEM footprint (bytes) for a given block_b."""
    rows = bb * L
    weights = 2 * (4 * D * D) * 2 + 2 * (4 * D) * 4             # bf16 weights + f32 biases (x2 buffers)
    blocks = 2 * rows * D * 2                                   # e1 block (bf16), double-buffered
    blocks += 2 * bb * L * 4 * 2                                # probs + mask blocks (f32)
    blocks += 2 * rows * D * 4                                  # out block (f32), double-buffered
    interm = rows * 3 * D * 4                                   # qv + k (f32)
    interm += rows * 3 * D * 2                                  # q3 / k3 / v3 (bf16)
    interm += bb * L * L * 4 * 3                                # mask_b + s + p (f32)
    interm += rows * D * 4 + rows * D * 2 + rows * D * 4        # ctx f32 + ctx bf16 + out f32
    return weights + blocks + interm


def _pick_block_b(B, L, D, H, vmem_block_budget=24 << 20):
    """block_b targeting >= ~512 projection rows per grid step, bounded by a
    VMEM budget; keep >= 2 grid steps so both v7x TensorCores get work."""
    bb = max(1, min(B, pl.cdiv(512, L)))
    while bb > 1 and _estimate_block_vmem(bb, L, D, H) > vmem_block_budget:
        bb = max(1, bb // 2)
    if B >= 2:
        bb = min(bb, pl.cdiv(B, 2))
    return bb


def lam_attention_pallas(e1_bf16, probs, mask_bias, params, num_heads):
    """e1_bf16: (B, L, D) bf16; probs: (B, L, 1) f32; mask_bias: (B, 1, L) f32."""
    B, L, D = e1_bf16.shape
    head_dim = D // num_heads
    block_b = _pick_block_b(B, L, D, num_heads)
    num_blocks = pl.cdiv(B, block_b)
    B_pad = num_blocks * block_b

    # Pad the batch instead of requiring block_b | B (padded rows are cheap
    # garbage, sliced off below).
    if B_pad != B:
        pad = B_pad - B
        e1_bf16 = jnp.pad(e1_bf16, ((0, pad), (0, 0), (0, 0)))
        probs = jnp.pad(probs, ((0, pad), (0, 0), (0, 0)))
        mask_bias = jnp.pad(mask_bias, ((0, pad), (0, 0), (0, 0)))

    # Host-side weight packing: pre-transpose, fuse Q/V, fold 1/sqrt(dh) into
    # Wq^T AND bq, cast MXU operands to bf16 (f32 accumulation in-kernel).
    scale = 1.0 / math.sqrt(head_dim)
    wqvT = jnp.concatenate([params["wq"].T * scale, params["wv"].T],
                           axis=1).astype(jnp.bfloat16)                      # (D, 2D)
    wkT = params["wk"].T.astype(jnp.bfloat16)                                # (D, D)
    woT = params["wo"].T.astype(jnp.bfloat16)                                # (D, D)
    bqv = jnp.concatenate([params["bq"] * scale, params["bv"]],
                          axis=1).astype(jnp.float32)                        # (1, 2D)
    bk = params["bk"].astype(jnp.float32)
    bo = params["bo"].astype(jnp.float32)

    kernel = functools.partial(lam_mha_kernel, num_heads=num_heads,
                               head_dim=head_dim, block_b=block_b, seq_len=L)

    per_block = lambda i: (i, 0, 0)
    whole_2d = lambda i: (0, 0)

    vmem_limit = int(min(48 << 20,
                         max(32 << 20,
                             2 * _estimate_block_vmem(block_b, L, D, num_heads))))

    out = pl.pallas_call(
        kernel,
        out_shape=jax.ShapeDtypeStruct((B_pad, L, D), jnp.float32),
        grid_spec=pltpu.PrefetchScalarGridSpec(
            num_scalar_prefetch=0,
            grid=(num_blocks,),
            in_specs=[
                pl.BlockSpec((block_b, L, D), per_block),   # e1 (bf16)
                pl.BlockSpec((block_b, L, 1), per_block),   # probs (f32)
                pl.BlockSpec((block_b, 1, L), per_block),   # key-padding bias (f32)
                pl.BlockSpec((D, 2 * D), whole_2d),         # [scale*Wq^T | Wv^T] bf16
                pl.BlockSpec((D, D), whole_2d),             # Wk^T bf16
                pl.BlockSpec((D, D), whole_2d),             # Wo^T bf16
                pl.BlockSpec((1, 2 * D), whole_2d),         # [scale*bq | bv] f32
                pl.BlockSpec((1, D), whole_2d),             # bk f32
                pl.BlockSpec((1, D), whole_2d),             # bo f32
            ],
            out_specs=pl.BlockSpec((block_b, L, D), per_block),
        ),
        compiler_params=pltpu.CompilerParams(
            dimension_semantics=("parallel",),
            vmem_limit_bytes=vmem_limit),
    )(e1_bf16, probs, mask_bias, wqvT, wkT, woT, bqv, bk, bo)

    return out[:B]


def lam_forward(labels, b_s, l_number, emb_table, probs, dims, params, num_heads):
    """JAX/Pallas equivalent of Lam.forward.

    labels: (b_s, L) int32 label ids (id == 1 means padding)
    probs:  (b_s, L) float32
    emb_table: (vocab, dims) float32 (the word_emb weight)
    returns: (b_s, l_number, L, dims) float32
    """
    L = labels.shape[1]

    # word_emb(labels); activations handed to the kernel in bf16 (MXU dtype).
    e1 = emb_table[labels].astype(jnp.bfloat16)                       # (b_s, L, D)
    probs3 = probs.astype(jnp.float32)[..., None]                     # (b_s, L, 1)

    # key_padding_mask (labels == 1) as additive bias
    pad = labels == 1
    mask_bias = jnp.where(pad, jnp.float32(-1e30), jnp.float32(0.0))[:, None, :]

    # All l_number replicas of torch.repeat_interleave see byte-identical
    # inputs, so attention runs once per batch row; only the final result is
    # broadcast (consumers that accept a broadcast view should use
    # out[:, None] directly to avoid materializing the replicas).
    out = lam_attention_pallas(e1, probs3, mask_bias, params, num_heads)   # (b_s, L, D) f32
    return jnp.broadcast_to(out[:, None], (b_s, l_number, L, dims))


def init_lam_params(key, d_model):
    """Deterministic init mirroring nn.MultiheadAttention parameter shapes.

    in_proj_weight (3*D, D) is represented split as wq/wk/wv (D, D) each;
    out_proj is a Linear(D, D).
    """
    ks = jax.random.split(key, 8)
    s = 1.0 / math.sqrt(d_model)
    return {
        "wq": jax.random.uniform(ks[0], (d_model, d_model), jnp.float32, -s, s),
        "wk": jax.random.uniform(ks[1], (d_model, d_model), jnp.float32, -s, s),
        "wv": jax.random.uniform(ks[2], (d_model, d_model), jnp.float32, -s, s),
        "wo": jax.random.uniform(ks[3], (d_model, d_model), jnp.float32, -s, s),
        "bq": jnp.zeros((1, d_model), jnp.float32),
        "bk": jnp.zeros((1, d_model), jnp.float32),
        "bv": jnp.zeros((1, d_model), jnp.float32),
        "bo": jax.random.uniform(ks[4], (1, d_model), jnp.float32, -s, s),
    }


if __name__ == "__main__":
    # small shapes implied by the forward: labels (b_s, L), d_model=dims, h heads
    b_s = 2
    l_number = 3
    L = 8           # labels per example (attention sequence length)
    d_model = 32
    num_heads = 4
    vocab = 16

    key = jax.random.PRNGKey(0)
    k_lab, k_prob, k_emb, k_par = jax.random.split(key, 4)

    # label ids in [2, vocab); force last position of each row to the padding id 1
    labels = jax.random.randint(k_lab, (b_s, L), 2, vocab, dtype=jnp.int32)
    labels = labels.at[:, -1].set(1)

    probs = jax.random.uniform(k_prob, (b_s, L), jnp.float32)
    emb_table = jax.random.normal(k_emb, (vocab, d_model), jnp.float32) * 0.1
    params = init_lam_params(k_par, d_model)

    out = lam_forward(labels, b_s, l_number, emb_table, probs, d_model,
                      params, num_heads)
    out = jax.block_until_ready(out)

    assert out.shape == (b_s, l_number, L, d_model)
    assert out.dtype == jnp.float32
    assert bool(jnp.all(jnp.isfinite(out)))
    print("KERNEL_OK")
</pallas_src>

<mosaic_0001>
module attributes {stable_mosaic.version = 11 : i64} {
  func.func @lam_mha_kernel(%arg0: i32, %arg1: memref<1x8x32xbf16, #tpu.memory_space<vmem>>, %arg2: memref<1x8x1xf32, #tpu.memory_space<vmem>>, %arg3: memref<1x1x8xf32, #tpu.memory_space<vmem>>, %arg4: memref<32x64xbf16, #tpu.memory_space<vmem>>, %arg5: memref<32x32xbf16, #tpu.memory_space<vmem>>, %arg6: memref<32x32xbf16, #tpu.memory_space<vmem>>, %arg7: memref<1x64xf32, #tpu.memory_space<vmem>>, %arg8: memref<1x32xf32, #tpu.memory_space<vmem>>, %arg9: memref<1x32xf32, #tpu.memory_space<vmem>>, %arg10: memref<1x8x32xf32, #tpu.memory_space<vmem>>) attributes {dimension_semantics = [#tpu.dimension_semantics<parallel>], iteration_bounds = array<i64: 2>, scalar_prefetch = 0 : i64, scratch_operands = 0 : i64, tpu.core_type = #tpu.core_type<tc>, window_params = [{transform_indices = @transform_0, window_bounds = array<i64: 1, 8, 32>}, {transform_indices = @transform_1, window_bounds = array<i64: 1, 8, 1>}, {transform_indices = @transform_2, window_bounds = array<i64: 1, 1, 8>}, {pipeline_mode = #tpu.pipeline_mode<synchronous>, transform_indices = @transform_3, window_bounds = array<i64: 32, 64>}, {pipeline_mode = #tpu.pipeline_mode<synchronous>, transform_indices = @transform_4, window_bounds = array<i64: 32, 32>}, {pipeline_mode = #tpu.pipeline_mode<synchronous>, transform_indices = @transform_5, window_bounds = array<i64: 32, 32>}, {pipeline_mode = #tpu.pipeline_mode<synchronous>, transform_indices = @transform_6, window_bounds = array<i64: 1, 64>}, {pipeline_mode = #tpu.pipeline_mode<synchronous>, transform_indices = @transform_7, window_bounds = array<i64: 1, 32>}, {pipeline_mode = #tpu.pipeline_mode<synchronous>, transform_indices = @transform_8, window_bounds = array<i64: 1, 32>}, {transform_indices = @transform_9, window_bounds = array<i64: 1, 8, 32>}]} {
    %c0 = arith.constant 0 : index
    %c0_0 = arith.constant 0 : index
    %c0_1 = arith.constant 0 : index
    %0 = vector.load %arg1[%c0, %c0_0, %c0_1] : memref<1x8x32xbf16, #tpu.memory_space<vmem>>, vector<1x8x32xbf16>
    %1 = arith.extf %0 : vector<1x8x32xbf16> to vector<1x8x32xf32>
    %c0_2 = arith.constant 0 : index
    %c0_3 = arith.constant 0 : index
    %c0_4 = arith.constant 0 : index
    %2 = vector.load %arg2[%c0_2, %c0_3, %c0_4] : memref<1x8x1xf32, #tpu.memory_space<vmem>>, vector<1x8x1xf32>
    %3 = vector.broadcast %2 : vector<1x8x1xf32> to vector<1x8x32xf32>
    %4 = arith.mulf %1, %3 : vector<1x8x32xf32>
    %5 = arith.truncf %4 : vector<1x8x32xf32> to vector<1x8x32xbf16>
    %6 = vector.shape_cast %0 : vector<1x8x32xbf16> to vector<8x32xbf16>
    %7 = vector.shape_cast %5 : vector<1x8x32xbf16> to vector<8x32xbf16>
    %c0_5 = arith.constant 0 : index
    %c0_6 = arith.constant 0 : index
    %8 = vector.load %arg4[%c0_5, %c0_6] : memref<32x64xbf16, #tpu.memory_space<vmem>>, vector<32x64xbf16>
    %cst = arith.constant dense<0.000000e+00> : vector<8x64xf32>
    %9 = tpu.matmul %6, %8, %cst {dimension_numbers = #tpu.dot_dimension_numbers<[1], [0], [0], [1], [0, 0, 1, 1], [], []>} : vector<8x32xbf16>, vector<32x64xbf16>, vector<8x64xf32> -> vector<8x64xf32>
    %c0_7 = arith.constant 0 : index
    %c0_8 = arith.constant 0 : index
    %10 = vector.load %arg7[%c0_7, %c0_8] : memref<1x64xf32, #tpu.memory_space<vmem>>, vector<1x64xf32>
    %11 = vector.broadcast %10 : vector<1x64xf32> to vector<8x64xf32>
    %12 = arith.addf %9, %11 : vector<8x64xf32>
    %c0_9 = arith.constant 0 : index
    %c0_10 = arith.constant 0 : index
    %13 = vector.load %arg5[%c0_9, %c0_10] : memref<32x32xbf16, #tpu.memory_space<vmem>>, vector<32x32xbf16>
    %cst_11 = arith.constant dense<0.000000e+00> : vector<8x32xf32>
    %14 = tpu.matmul %7, %13, %cst_11 {dimension_numbers = #tpu.dot_dimension_numbers<[1], [0], [0], [1], [0, 0, 1, 1], [], []>} : vector<8x32xbf16>, vector<32x32xbf16>, vector<8x32xf32> -> vector<8x32xf32>
    %c0_12 = arith.constant 0 : index
    %c0_13 = arith.constant 0 : index
    %15 = vector.load %arg8[%c0_12, %c0_13] : memref<1x32xf32, #tpu.memory_space<vmem>>, vector<1x32xf32>
    %16 = vector.broadcast %15 : vector<1x32xf32> to vector<8x32xf32>
    %17 = arith.addf %14, %16 : vector<8x32xf32>
    %18 = vector.extract_strided_slice %12 {offsets = [0, 0], sizes = [8, 32], strides = [1, 1]} : vector<8x64xf32> to vector<8x32xf32>
    %19 = vector.shape_cast %18 : vector<8x32xf32> to vector<1x8x32xf32>
    %20 = arith.truncf %19 : vector<1x8x32xf32> to vector<1x8x32xbf16>
    %21 = vector.extract_strided_slice %12 {offsets = [0, 32], sizes = [8, 32], strides = [1, 1]} : vector<8x64xf32> to vector<8x32xf32>
    %22 = vector.shape_cast %21 : vector<8x32xf32> to vector<1x8x32xf32>
    %23 = arith.truncf %22 : vector<1x8x32xf32> to vector<1x8x32xbf16>
    %24 = vector.shape_cast %17 : vector<8x32xf32> to vector<1x8x32xf32>
    %25 = arith.truncf %24 : vector<1x8x32xf32> to vector<1x8x32xbf16>
    %c0_14 = arith.constant 0 : index
    %c0_15 = arith.constant 0 : index
    %c0_16 = arith.constant 0 : index
    %26 = vector.load %arg3[%c0_14, %c0_15, %c0_16] : memref<1x1x8xf32, #tpu.memory_space<vmem>>, vector<1x1x8xf32>
    %27 = vector.shape_cast %26 : vector<1x1x8xf32> to vector<1x1x8xf32>
    %28 = vector.broadcast %27 : vector<1x1x8xf32> to vector<1x8x8xf32>
    %29 = vector.extract_strided_slice %20 {offsets = [0, 0, 0], sizes = [1, 8, 8], strides = [1, 1, 1]} : vector<1x8x32xbf16> to vector<1x8x8xbf16>
    %30 = vector.extract_strided_slice %25 {offsets = [0, 0, 0], sizes = [1, 8, 8], strides = [1, 1, 1]} : vector<1x8x32xbf16> to vector<1x8x8xbf16>
    %31 = vector.extract_strided_slice %23 {offsets = [0, 0, 0], sizes = [1, 8, 8], strides = [1, 1, 1]} : vector<1x8x32xbf16> to vector<1x8x8xbf16>
    "tpu.trace_start"() <{level = 10 : i32, message = "bqd,bkd->bqk"}> : () -> ()
    %cst_17 = arith.constant dense<0.000000e+00> : vector<1x8x8xf32>
    %32 = tpu.matmul %29, %30, %cst_17 {dimension_numbers = #tpu.dot_dimension_numbers<[2], [2], [1], [1], [0, 0, 0, 1, 1, 1], [0], [0]>} : vector<1x8x8xbf16>, vector<1x8x8xbf16>, vector<1x8x8xf32> -> vector<1x8x8xf32>
    "tpu.trace_stop"() : () -> ()
    %33 = arith.addf %32, %28 : vector<1x8x8xf32>
    %cst_18 = arith.constant dense<0xFF800000> : vector<1x8xf32>
    %34 = vector.multi_reduction <maximumf>, %33, %cst_18 [2] : vector<1x8x8xf32> to vector<1x8xf32>
    %35 = vector.shape_cast %34 : vector<1x8xf32> to vector<1x8x1xf32>
    %36 = vector.broadcast %35 : vector<1x8x1xf32> to vector<1x8x8xf32>
    %37 = arith.subf %33, %36 : vector<1x8x8xf32>
    %38 = math.exp %37 : vector<1x8x8xf32>
    %cst_19 = arith.constant dense<0.000000e+00> : vector<1x8xf32>
    %39 = vector.multi_reduction <add>, %38, %cst_19 [2] : vector<1x8x8xf32> to vector<1x8xf32>
    %40 = vector.shape_cast %39 : vector<1x8xf32> to vector<1x8x1xf32>
    %41 = tpu.reciprocal %40 {approx = true} : vector<1x8x1xf32> -> vector<1x8x1xf32>
    %42 = vector.broadcast %41 : vector<1x8x1xf32> to vector<1x8x8xf32>
    %43 = arith.mulf %38, %42 : vector<1x8x8xf32>
    %44 = arith.truncf %43 : vector<1x8x8xf32> to vector<1x8x8xbf16>
    "tpu.trace_start"() <{level = 10 : i32, message = "bqk,bkd->bqd"}> : () -> ()
    %cst_20 = arith.constant dense<0.000000e+00> : vector<1x8x8xf32>
    %45 = tpu.matmul %44, %31, %cst_20 {dimension_numbers = #tpu.dot_dimension_numbers<[2], [1], [1], [2], [0, 0, 0, 1, 1, 2], [0], [0]>} : vector<1x8x8xbf16>, vector<1x8x8xbf16>, vector<1x8x8xf32> -> vector<1x8x8xf32>
    "tpu.trace_stop"() : () -> ()
    %46 = vector.extract_strided_slice %20 {offsets = [0, 0, 8], sizes = [1, 8, 8], strides = [1, 1, 1]} : vector<1x8x32xbf16> to vector<1x8x8xbf16>
    %47 = vector.extract_strided_slice %25 {offsets = [0, 0, 8], sizes = [1, 8, 8], strides = [1, 1, 1]} : vector<1x8x32xbf16> to vector<1x8x8xbf16>
    %48 = vector.extract_strided_slice %23 {offsets = [0, 0, 8], sizes = [1, 8, 8], strides = [1, 1, 1]} : vector<1x8x32xbf16> to vector<1x8x8xbf16>
    "tpu.trace_start"() <{level = 10 : i32, message = "bqd,bkd->bqk"}> : () -> ()
    %cst_21 = arith.constant dense<0.000000e+00> : vector<1x8x8xf32>
    %49 = tpu.matmul %46, %47, %cst_21 {dimension_numbers = #tpu.dot_dimension_numbers<[2], [2], [1], [1], [0, 0, 0, 1, 1, 1], [0], [0]>} : vector<1x8x8xbf16>, vector<1x8x8xbf16>, vector<1x8x8xf32> -> vector<1x8x8xf32>
    "tpu.trace_stop"() : () -> ()
    %50 = arith.addf %49, %28 : vector<1x8x8xf32>
    %cst_22 = arith.constant dense<0xFF800000> : vector<1x8xf32>
    %51 = vector.multi_reduction <maximumf>, %50, %cst_22 [2] : vector<1x8x8xf32> to vector<1x8xf32>
    %52 = vector.shape_cast %51 : vector<1x8xf32> to vector<1x8x1xf32>
    %53 = vector.broadcast %52 : vector<1x8x1xf32> to vector<1x8x8xf32>
    %54 = arith.subf %50, %53 : vector<1x8x8xf32>
    %55 = math.exp %54 : vector<1x8x8xf32>
    %cst_23 = arith.constant dense<0.000000e+00> : vector<1x8xf32>
    %56 = vector.multi_reduction <add>, %55, %cst_23 [2] : vector<1x8x8xf32> to vector<1x8xf32>
    %57 = vector.shape_cast %56 : vector<1x8xf32> to vector<1x8x1xf32>
    %58 = tpu.reciprocal %57 {approx = true} : vector<1x8x1xf32> -> vector<1x8x1xf32>
    %59 = vector.broadcast %58 : vector<1x8x1xf32> to vector<1x8x8xf32>
    %60 = arith.mulf %55, %59 : vector<1x8x8xf32>
    %61 = arith.truncf %60 : vector<1x8x8xf32> to vector<1x8x8xbf16>
    "tpu.trace_start"() <{level = 10 : i32, message = "bqk,bkd->bqd"}> : () -> ()
    %cst_24 = arith.constant dense<0.000000e+00> : vector<1x8x8xf32>
    %62 = tpu.matmul %61, %48, %cst_24 {dimension_numbers = #tpu.dot_dimension_numbers<[2], [1], [1], [2], [0, 0, 0, 1, 1, 2], [0], [0]>} : vector<1x8x8xbf16>, vector<1x8x8xbf16>, vector<1x8x8xf32> -> vector<1x8x8xf32>
    "tpu.trace_stop"() : () -> ()
    %63 = vector.extract_strided_slice %20 {offsets = [0, 0, 16], sizes = [1, 8, 8], strides = [1, 1, 1]} : vector<1x8x32xbf16> to vector<1x8x8xbf16>
    %64 = vector.extract_strided_slice %25 {offsets = [0, 0, 16], sizes = [1, 8, 8], strides = [1, 1, 1]} : vector<1x8x32xbf16> to vector<1x8x8xbf16>
    %65 = vector.extract_strided_slice %23 {offsets = [0, 0, 16], sizes = [1, 8, 8], strides = [1, 1, 1]} : vector<1x8x32xbf16> to vector<1x8x8xbf16>
    "tpu.trace_start"() <{level = 10 : i32, message = "bqd,bkd->bqk"}> : () -> ()
    %cst_25 = arith.constant dense<0.000000e+00> : vector<1x8x8xf32>
    %66 = tpu.matmul %63, %64, %cst_25 {dimension_numbers = #tpu.dot_dimension_numbers<[2], [2], [1], [1], [0, 0, 0, 1, 1, 1], [0], [0]>} : vector<1x8x8xbf16>, vector<1x8x8xbf16>, vector<1x8x8xf32> -> vector<1x8x8xf32>
    "tpu.trace_stop"() : () -> ()
    %67 = arith.addf %66, %28 : vector<1x8x8xf32>
    %cst_26 = arith.constant dense<0xFF800000> : vector<1x8xf32>
    %68 = vector.multi_reduction <maximumf>, %67, %cst_26 [2] : vector<1x8x8xf32> to vector<1x8xf32>
    %69 = vector.shape_cast %68 : vector<1x8xf32> to vector<1x8x1xf32>
    %70 = vector.broadcast %69 : vector<1x8x1xf32> to vector<1x8x8xf32>
    %71 = arith.subf %67, %70 : vector<1x8x8xf32>
    %72 = math.exp %71 : vector<1x8x8xf32>
    %cst_27 = arith.constant dense<0.000000e+00> : vector<1x8xf32>
    %73 = vector.multi_reduction <add>, %72, %cst_27 [2] : vector<1x8x8xf32> to vector<1x8xf32>
    %74 = vector.shape_cast %73 : vector<1x8xf32> to vector<1x8x1xf32>
    %75 = tpu.reciprocal %74 {approx = true} : vector<1x8x1xf32> -> vector<1x8x1xf32>
    %76 = vector.broadcast %75 : vector<1x8x1xf32> to vector<1x8x8xf32>
    %77 = arith.mulf %72, %76 : vector<1x8x8xf32>
    %78 = arith.truncf %77 : vector<1x8x8xf32> to vector<1x8x8xbf16>
    "tpu.trace_start"() <{level = 10 : i32, message = "bqk,bkd->bqd"}> : () -> ()
    %cst_28 = arith.constant dense<0.000000e+00> : vector<1x8x8xf32>
    %79 = tpu.matmul %78, %65, %cst_28 {dimension_numbers = #tpu.dot_dimension_numbers<[2], [1], [1], [2], [0, 0, 0, 1, 1, 2], [0], [0]>} : vector<1x8x8xbf16>, vector<1x8x8xbf16>, vector<1x8x8xf32> -> vector<1x8x8xf32>
    "tpu.trace_stop"() : () -> ()
    %80 = vector.extract_strided_slice %20 {offsets = [0, 0, 24], sizes = [1, 8, 8], strides = [1, 1, 1]} : vector<1x8x32xbf16> to vector<1x8x8xbf16>
    %81 = vector.extract_strided_slice %25 {offsets = [0, 0, 24], sizes = [1, 8, 8], strides = [1, 1, 1]} : vector<1x8x32xbf16> to vector<1x8x8xbf16>
    %82 = vector.extract_strided_slice %23 {offsets = [0, 0, 24], sizes = [1, 8, 8], strides = [1, 1, 1]} : vector<1x8x32xbf16> to vector<1x8x8xbf16>
    "tpu.trace_start"() <{level = 10 : i32, message = "bqd,bkd->bqk"}> : () -> ()
    %cst_29 = arith.constant dense<0.000000e+00> : vector<1x8x8xf32>
    %83 = tpu.matmul %80, %81, %cst_29 {dimension_numbers = #tpu.dot_dimension_numbers<[2], [2], [1], [1], [0, 0, 0, 1, 1, 1], [0], [0]>} : vector<1x8x8xbf16>, vector<1x8x8xbf16>, vector<1x8x8xf32> -> vector<1x8x8xf32>
    "tpu.trace_stop"() : () -> ()
    %84 = arith.addf %83, %28 : vector<1x8x8xf32>
    %cst_30 = arith.constant dense<0xFF800000> : vector<1x8xf32>
    %85 = vector.multi_reduction <maximumf>, %84, %cst_30 [2] : vector<1x8x8xf32> to vector<1x8xf32>
    %86 = vector.shape_cast %85 : vector<1x8xf32> to vector<1x8x1xf32>
    %87 = vector.broadcast %86 : vector<1x8x1xf32> to vector<1x8x8xf32>
    %88 = arith.subf %84, %87 : vector<1x8x8xf32>
    %89 = math.exp %88 : vector<1x8x8xf32>
    %cst_31 = arith.constant dense<0.000000e+00> : vector<1x8xf32>
    %90 = vector.multi_reduction <add>, %89, %cst_31 [2] : vector<1x8x8xf32> to vector<1x8xf32>
    %91 = vector.shape_cast %90 : vector<1x8xf32> to vector<1x8x1xf32>
    %92 = tpu.reciprocal %91 {approx = true} : vector<1x8x1xf32> -> vector<1x8x1xf32>
    %93 = vector.broadcast %92 : vector<1x8x1xf32> to vector<1x8x8xf32>
    %94 = arith.mulf %89, %93 : vector<1x8x8xf32>
    %95 = arith.truncf %94 : vector<1x8x8xf32> to vector<1x8x8xbf16>
    "tpu.trace_start"() <{level = 10 : i32, message = "bqk,bkd->bqd"}> : () -> ()
    %cst_32 = arith.constant dense<0.000000e+00> : vector<1x8x8xf32>
    %96 = tpu.matmul %95, %82, %cst_32 {dimension_numbers = #tpu.dot_dimension_numbers<[2], [1], [1], [2], [0, 0, 0, 1, 1, 2], [0], [0]>} : vector<1x8x8xbf16>, vector<1x8x8xbf16>, vector<1x8x8xf32> -> vector<1x8x8xf32>
    "tpu.trace_stop"() : () -> ()
    %97 = tpu.concatenate %45, %62, %79, %96 in 2 : vector<1x8x8xf32>, vector<1x8x8xf32>, vector<1x8x8xf32>, vector<1x8x8xf32> -> vector<1x8x32xf32>
    %98 = vector.shape_cast %97 : vector<1x8x32xf32> to vector<8x32xf32>
    %99 = arith.truncf %98 : vector<8x32xf32> to vector<8x32xbf16>
    %c0_33 = arith.constant 0 : index
    %c0_34 = arith.constant 0 : index
    %100 = vector.load %arg6[%c0_33, %c0_34] : memref<32x32xbf16, #tpu.memory_space<vmem>>, vector<32x32xbf16>
    %cst_35 = arith.constant dense<0.000000e+00> : vector<8x32xf32>
    %101 = tpu.matmul %99, %100, %cst_35 {dimension_numbers = #tpu.dot_dimension_numbers<[1], [0], [0], [1], [0, 0, 1, 1], [], []>} : vector<8x32xbf16>, vector<32x32xbf16>, vector<8x32xf32> -> vector<8x32xf32>
    %c0_36 = arith.constant 0 : index
    %c0_37 = arith.constant 0 : index
    %102 = vector.load %arg9[%c0_36, %c0_37] : memref<1x32xf32, #tpu.memory_space<vmem>>, vector<1x32xf32>
    %103 = vector.broadcast %102 : vector<1x32xf32> to vector<8x32xf32>
    %104 = arith.addf %101, %103 : vector<8x32xf32>
    %105 = arith.negf %104 : vector<8x32xf32>
    %106 = math.exp %105 : vector<8x32xf32>
    %cst_38 = arith.constant 1.000000e+00 : f32
    %107 = vector.broadcast %cst_38 : f32 to vector<8x32xf32>
    %108 = arith.addf %107, %106 : vector<8x32xf32>
    %109 = arith.divf %107, %108 : vector<8x32xf32>
    %110 = vector.shape_cast %109 : vector<8x32xf32> to vector<1x8x32xf32>
    %c0_39 = arith.constant 0 : index
    %c0_40 = arith.constant 0 : index
    %c0_41 = arith.constant 0 : index
    %111 = vector.load %arg10[%c0_39, %c0_40, %c0_41] : memref<1x8x32xf32, #tpu.memory_space<vmem>>, vector<1x8x32xf32>
    tpu.vector_store %arg10[%c0_39, %c0_40, %c0_41], %110 {strides = array<i32>} : memref<1x8x32xf32, #tpu.memory_space<vmem>>, vector<1x8x32xf32>,
    return
  }
  func.func @transform_0(%arg0: i32) -> (i32, i32, i32) {
    %c0_i32 = arith.constant 0 : i32
    %c0_i32_0 = arith.constant 0 : i32
    %c0_i32_1 = arith.constant 0 : i32
    return %arg0, %c0_i32, %c0_i32_0 : i32, i32, i32
  }
  func.func @transform_1(%arg0: i32) -> (i32, i32, i32) {
    %c0_i32 = arith.constant 0 : i32
    %c0_i32_0 = arith.constant 0 : i32
    %c0_i32_1 = arith.constant 0 : i32
    return %arg0, %c0_i32, %c0_i32_0 : i32, i32, i32
  }
  func.func @transform_2(%arg0: i32) -> (i32, i32, i32) {
    %c0_i32 = arith.constant 0 : i32
    %c0_i32_0 = arith.constant 0 : i32
    %c0_i32_1 = arith.constant 0 : i32
    return %arg0, %c0_i32, %c0_i32_0 : i32, i32, i32
  }
  func.func @transform_3(%arg0: i32) -> (i32, i32) {
    %c0_i32 = arith.constant 0 : i32
    %c0_i32_0 = arith.constant 0 : i32
    %c0_i32_1 = arith.constant 0 : i32
    return %c0_i32, %c0_i32_0 : i32, i32
  }
  func.func @transform_4(%arg0: i32) -> (i32, i32) {
    %c0_i32 = arith.constant 0 : i32
    %c0_i32_0 = arith.constant 0 : i32
    %c0_i32_1 = arith.constant 0 : i32
    return %c0_i32, %c0_i32_0 : i32, i32
  }
  func.func @transform_5(%arg0: i32) -> (i32, i32) {
    %c0_i32 = arith.constant 0 : i32
    %c0_i32_0 = arith.constant 0 : i32
    %c0_i32_1 = arith.constant 0 : i32
    return %c0_i32, %c0_i32_0 : i32, i32
  }
  func.func @transform_6(%arg0: i32) -> (i32, i32) {
    %c0_i32 = arith.constant 0 : i32
    %c0_i32_0 = arith.constant 0 : i32
    %c0_i32_1 = arith.constant 0 : i32
    return %c0_i32, %c0_i32_0 : i32, i32
  }
  func.func @transform_7(%arg0: i32) -> (i32, i32) {
    %c0_i32 = arith.constant 0 : i32
    %c0_i32_0 = arith.constant 0 : i32
    %c0_i32_1 = arith.constant 0 : i32
    return %c0_i32, %c0_i32_0 : i32, i32
  }
  func.func @transform_8(%arg0: i32) -> (i32, i32) {
    %c0_i32 = arith.constant 0 : i32
    %c0_i32_0 = arith.constant 0 : i32
    %c0_i32_1 = arith.constant 0 : i32
    return %c0_i32, %c0_i32_0 : i32, i32
  }
  func.func @transform_9(%arg0: i32) -> (i32, i32, i32) {
    %c0_i32 = arith.constant 0 : i32
    %c0_i32_0 = arith.constant 0 : i32
    %c0_i32_1 = arith.constant 0 : i32
    return %arg0, %c0_i32, %c0_i32_0 : i32, i32, i32
  }
}

</mosaic_0001>

<bundles_post_ra>
// kernel: tpu_custom_call.1
= control target key start
LH: loop header
LB: loop body
LE: loop exit
PB: predicated region body
PF: predicated region fallthrough
CT: control target
= control target key end

     0   :  { %s1542_s0 = inlined_call_operand.hbm [shape: bf16[2,8,32], index: 0, kind: input, shape index: {}]   ;;  %s1543_s1 = inlined_call_operand.vmem [shape: f32[2,8,1], index: 1, kind: input, shape index: {}]   ;;  %s1544_s2 = inlined_call_operand.vmem [shape: f32[2,1,8], index: 2, kind: input, shape index: {}]   ;;  %s1545_s3 = inlined_call_operand.vmem [shape: bf16[32,64], index: 3, kind: input, shape index: {}]   ;;  %s1546_s4 = inlined_call_operand.hbm [shape: bf16[32,32], index: 4, kind: input, shape index: {}]   ;;  %s1547_s5 = inlined_call_operand.hbm [shape: bf16[32,32], index: 5, kind: input, shape index: {}]   ;;  %s1548_s6 = inlined_call_operand.vmem [shape: f32[1,64], index: 6, kind: input, shape index: {}]   ;;  %s1549_s7 = inlined_call_operand.vmem [shape: f32[1,32], index: 7, kind: input, shape index: {}]   ;;  %s1550_s8 = inlined_call_operand.vmem [shape: f32[1,32], index: 8, kind: input, shape index: {}]   ;;  %s1551_s9 = inlined_call_operand.hbm [shape: f32[2,8,32], index: 9, kind: output, shape index: {}]  }
   0x1   :  { %1553 = sst [smem:[#allocation14_spill]] %s1546_s4 }
   0x2   :  { %1554 = sst [smem:[#allocation15_spill]] %s1547_s5 }
   0x3   :  { %14 = vsyncpa [#allocation3], 0 }
   0x4   :  { %16 = vsyncpa [#allocation3 + $0x1], 0 }
   0x5   :  { %17 = vsyncpa [#allocation6], 0 }
   0x6   :  { %18 = vsyncpa [#allocation4], 0 }
   0x7   :  { %20 = vsyncpa [#allocation4 + $0x1], 0  ;;  %s1323_s30 = smov 0   ;;  %s1325_s10 = smov 0  }
   0x8   :  { %s1327_s11 = smov 0   ;;  %s1329_s12 = smov 0  }
   0x9 LB: > { %1555 = sst [smem:[#allocation12_spill]] %s1252_s11  ;;  %s1347_s16 = sadd.s32 4294967295, %s1256_s12   ;;  %s1256_s12 = sphi %s1329_s12, %s1570_s12   ;;  %s1252_s11 = sphi %s1327_s11, %s1567_s11   ;;  %s1248_s10 = sphi %s1325_s10, %s1569_s10   ;;  %s1244_s30 = sphi %s1323_s30, %s1568_s30  }
   0xa   : > { %s1556_s4 = sld [smem:[#allocation14_spill]]  ;;  %p933_p0 = scmp.ge.s32.totalorder %s1256_s12, 1 }
   0xb   : > { %p47_p1 = scmp.eq.s32.totalorder %s1347_s16, 0  ;;  %p261_p2 = scmp.lt.s32.totalorder %s1256_s12, 3 }
   0xc   : > { %s1258_s18 = smov [#allocation5]   ;;  %s1558_s5 = sld [smem:[#allocation15_spill]] }
   0xd   : > { %p1352_p3 = pnand %p933_p0, %p261_p2  ;;  %s277_s19 = sshll.u32 %s1258_s18, 4  ;;  %s278_s19 = int_to_ptr.vmem [resolvable:$true] %s277_s19 }
   0xe   : > { %s1259_s23 = smov [#allocation7]   ;;  %s1260_s25 = smov 64  }
   0xf   : > { %p1003_p4 = pneg %p1352_p3  ;;  %s291_s24 = sshll.u32 %s1259_s23, 4  ;;  %s292_s24 = int_to_ptr.vmem [resolvable:$true] %s291_s24 }
  0x10   : > { %s275_s15 = sshll.u32 %s1556_s4, 4  ;;  %s1261_s26 = smov 4   ;;  %s276_s15 = int_to_ptr.hbm [resolvable:$true] %s275_s15 }
  0x11   : > { %p1004_p6 = pnand %p1003_p4, %p47_p1  ;;  %s932_s27 = sadd.s32 4294967294, %s1256_s12  }
  0x12   : > { %s289_s22 = sshll.u32 %s1558_s5, 4  ;;  %s1366_s28 = sadd.s32 1, %s1256_s12   ;;  %s290_s22 = int_to_ptr.hbm [resolvable:$true] %s289_s22 }
  0x13   : > { %1006 = dma.hbm_to_vmem [thread:$0]  (!%p1004_p6), %s276_s15, 256, %s278_s19, [#allocation6], %s1260_s25, %s1260_s25, %s1261_s26  }
  0x14   : > { %1009 = dma.hbm_to_vmem [thread:$0]  (!%p1004_p6), %s290_s22, 256, %s292_s24, [#allocation6], %s1260_s25, %s1260_s25, %s1261_s26  }
  0x15   : > { %s30_s29 = ssub.s32 %s1256_s12, %s1366_s28  ;;  %s33_s13 = sadd.s32 1, %s1252_s11 }
  0x16   : > { %p31_p7 = scmp.eq.s32.totalorder %s30_s29, 0  ;;  %p40_p8 = scmp.ne.s32.totalorder %s1252_s11, %s1248_s10 }
  0x17   : > { %p41_p9 = scmp.eq.s32.totalorder %s1256_s12, 0  ;;  %p46_p10 = scmp.ne.s32.totalorder %s1248_s10, %s1244_s30 }
  0x18   : > { %s1377_s14 = scalar_select %p31_p7, %s1252_s11, %s33_s13  }
  0x19   : > { %p1379_p11 = por %p41_p9, %p40_p8  ;;  %p1385_p12 = por %p47_p1, %p46_p10 }
  0x1a   : > { %1559 = sst [smem:[#allocation13_spill]] %s1377_s14  ;;  %p248_p13 = scmp.eq.s32.totalorder %s1347_s16, 1 }
  0x1b   : > { %p254_p0 = scmp.eq.s32.totalorder %s932_s27, 1  ;;  %p1020_p2 = scmp.lt.s32.totalorder %s1256_s12, 2 }
  0x1c   : > { %s314_s19 = sand.u32 1, %s1252_s11   ;;  %p1392_p4 = por %p248_p13, %p40_p8 }
  0x1d   : > { %p1396_p6 = por %p254_p0, %p46_p10  ;;  %s937_s22 = sshll.u32 %s314_s19, 2 }
  0x1e   : > { %s938_s23 = sshll.u32 %s1256_s12, 2  ;;  %s318_s29 = scalar_lea.vmem [#allocation2], %s937_s22 }
  0x1f   : > { %s322_s26 = scalar_lea.hbm %s1542_s0, %s938_s23  ;;  %s326_s13 = sshll.u32 %s318_s29, 4  ;;  %s327_s13 = int_to_ptr.vmem [resolvable:$true] %s326_s13 }
  0x20   : > { %s324_s4 = sshll.u32 %s322_s26, 4  ;;  %p1406_p7 = pnand %p1020_p2, %p1379_p11  ;;  %s325_s4 = int_to_ptr.hbm [resolvable:$true] %s324_s4 }
  0x21   : > { %s315_s5 = scalar_lea.sflag [#allocation3], %s314_s19  ;;  %s1156_s14 = sshra.s32 %s325_s4, 4  ;;  %s1157_s14 = int_to_ptr.hbm [resolvable:$true] %s1156_s14 }
  0x22   : > { %s1158_s11 = scalar_lea.hbm %s1157_s14, 4  ;;  %p1160_p9 = pneg %p1406_p7 }
  0x23   : > { %p1159_p8 = scmp.ne.s32.totalorder %s1157_s14, %s1158_s11  ;;  %s1163_s24 = scalar_lea.hbm %s1542_s0, 8 }
  0x24   : > { %p1164_p11 = scmp.lt.s32.totalorder %s1157_s14, %s1542_s0  ;;  %p1165_p0 = scmp.lt.s32.totalorder %s1163_s24, %s1158_s11 }
  0x25   : > { %p1161_p10 = pnand %p1160_p9, %p1159_p8 }
  0x26   : > { %p1166_p2 = por %p1165_p0, %p1164_p11 }
  0x27   : > { %p1162_p13 = pneg %p1161_p10 }
  0x29   : > { %p1167_p5 = pnand %p1166_p2, %p1162_p13 }
  0x2b   : > { %1170 = shalt.err (!%p1167_p5)
}
  0x2c   : > { %1013 = dma.hbm_to_vmem [thread:$0]  (!%p1406_p7), %s325_s4, 64, %s327_s13, %s315_s5  }
  0x2d   : > { %348 = sbr.rel (%p1352_p3) target bundleno = 1559 (0x617), region = 56  ;;  %s1423_s19 = sand.u32 (!%p1352_p3), 1, %s1248_s10  }
  0x2e   : > { %s940_s26 = sshll.u32 (!%p1352_p3), %s1423_s19, 2  ;;  %s351_s29 = scalar_lea.sflag (!%p1352_p3), [#allocation3], %s1423_s19 }
  0x2f   : > { %s354_s22 = scalar_lea.vmem (!%p1352_p3), [#allocation2], %s940_s26 }
  0x32   : > { %1231 = dma.done.wait (%p1385_p12), %s351_s29, 64  }
  0x33   : > { %1233 = vsyncadd (%p1385_p12), %s351_s29, 4294967232 }
  0x34   : > { %1235 = dma.done.wait (%p47_p1), [#allocation6], 512  }
  0x35   : > { %1237 = vsyncadd (%p47_p1), [#allocation6], 4294966784  ;;  %p407_p3 = scmp.lt.s32.totalorder %s1347_s16, 1  ;;  %v1262_v0 = vmov 0   ;;  %v986_v2 = vld [vmem:[%s1545_s3 + $0x8] sm:$0xff]  ;;  %v988_v3 = vld [vmem:[#allocation5 + $0x8] sm:$0xff] }
  0x36   : > { %1071 = vset.pattern.permute.xlu0 %v1262_v0  ;;  %455 = vmatpush.bf16.msra.mxu0 %v986_v2  ;;  %v985_v4 = vld [vmem:[%s1545_s3] sm:$0xff]  ;;  %v987_v5 = vld [vmem:[#allocation5] sm:$0xff]  ;;  %vm445_vm0 = vcmask 261120   ;;  %vm504_vm1 = vcmask 64512   ;;  %s1264_s17 = smov 112   ;;  %s1266_s23 = smov 96  }
  0x37   : > { %s1437_s4 = scalar_select %p407_p3, %s1347_s16, 1  ;;  %491 = vmatpush.bf16.msra.mxu1 %v988_v3  ;;  %v415_v6 = vld [vmem:[%s354_s22] sm:$0xf]  ;;  %vm544_vm2 = vcmask 1043456   ;;  %vm745_vm3 = vcmask 130048   ;;  %vm747_vm4 = vcmask 195584  }
  0x38   : > { %v416_v7 = vunpack.c.l.bf16 %v415_v6  ;;  %v1073_v13 = vld [vmem:[%s1548_s6] ss:$0 sm:$0xff]  ;;  %s1263_s22 = smov 120   ;;  %s1269_s24 = smov 80  }
  0x39   : > { %s944_s5 = sshll.u32 %s1437_s4, 3  ;;  %s413_s27 = scalar_lea.vmem %s1544_s2, %s1437_s4  ;;  %v1074_v14 = vld [vmem:[%s1549_s7] ss:$0 sm:$0xff] }
  0x3a   : > { %s410_s14 = scalar_lea.vmem %s1543_s1, %s944_s5  ;;  %456 = vmatpush.bf16.msra.mxu0 %v985_v4  ;;  %v1072_v32 = vld [vmem:[%s413_s27] ss:$0 sm:$0xff]  ;;  %s1267_s4 = smov 72  }
  0x3b   : > { %v417_v1 = vld [vmem:[%s410_s14] sm:$0xff]  ;;  %492 = vmatpush.bf16.msra.mxu1 %v987_v5  ;;  %s1265_s14 = smov 104   ;;  %s1268_s27 = smov 88  }
  0x3c   : > { %420 = vperm.xlu0 %1071, %v417_v1   ;;  %s1270_s25 = smov 8   ;;  %s1271_s18 = smov 16  }
  0x3d   : > { %953 = vmatmul.msk.bf16.vlgmr.msra.gmra.mxu0 %vm445_vm0, %v415_v6  ;;  %s1272_s26 = smov 24   ;;  %s943_s11 = sshll.u32 %s1423_s19, 3 }
  0x3e   : > { %s406_s13 = scalar_lea.vmem [#allocation8], %s943_s11 }
  0xae   : > { %v421_v8 = vpop.permute.xlu0 %420 }
  0xaf   : > { %v423_v9 = vmul.f32 %v421_v8, %v416_v7 }
  0xb1   : > { %v424_v10 = vpack.c.bf16 %v423_v9, %v423_v9 }
  0xb3   : > { %962 = vmatmul.msk.bf16.vlgmr.msra.gmra.mxu1 %vm445_vm0, %v424_v10 }
  0xba   : > { %v458_v11 = vpop.f32.mrf.mxu0 }
  0xbb   : > { %v459_v16 = vadd.f32 %v1073_v13, %v458_v11 }
  0xbd   : > { %v498_v19 = vpack.c.bf16 %v459_v16, %v459_v16 }
  0xbf   : > { %v537_v24 = vunpack.c.l.b16 %v498_v19 }
  0xc1   : > { %v1462_v25 = vpack.c.b16 %v537_v24, %v537_v24 }
  0xc2   : > { %v460_v12 = vpop.f32.mrf.mxu0 }
 0x130   : > { %v494_v15 = vpop.f32.mrf.mxu1 }
 0x131   : > { %v495_v17 = vadd.f32 %v1074_v14, %v494_v15 }
 0x133   : > { %v499_v18 = vpack.c.bf16 %v495_v17, %v495_v17 }
 0x135   : > { %v564_v20 = vunpack.c.l.b16 %v499_v18  ;;  %v509_v21 = vsel %vm504_vm1, %v499_v18, 0 }
 0x136   : > { %518 = vmatpush.bf16.xpose.msra.mxu2 %v509_v21 }
 0x137   : > { %v565_v22 = vpack.c.b16 %v564_v20, %v564_v20 }
 0x138   : > { %v496_v23 = vpop.f32.mrf.mxu1 }
 0x139   : > { %566 = vrot.lane.b32.xlu2 %v565_v22, %s1263_s22 }
 0x13d   : > { %963 = vmatmul.msk.bf16.vlgmr.msra.gmra.mxu2 %vm504_vm1, %v498_v19 }
 0x141   : > { %561 = vrot.lane.b32.xlu2 %v1462_v25, %s1263_s22  ;;  %s982_s22 = sshll.u32 %s1347_s16, 3  ;;  %s807_s16 = scalar_lea.sflag [#allocation4], %s1423_s19 }
 0x142   : > { %s817_s15 = scalar_lea.hbm %s1551_s9, %s982_s22 }
 0x149   : > { %622 = vrot.lane.b32.xlu2 %v565_v22, %s1264_s17 }
 0x151   : > { %678 = vrot.lane.b32.xlu2 %v565_v22, %s1265_s14 }
 0x159   : > { %620 = vrot.lane.b32.xlu2 %v1462_v25, %s1264_s17 }
 0x193   : > { %v567_v26 = vpop.permute.xlu2 %566 }
 0x194   : > { %v572_v51 = vsel %vm504_vm1, %v567_v26, 0 }
 0x19b   : > { %v562_v27 = vpop.permute.xlu2 %561 }
 0x1a3   : > { %v623_v28 = vpop.permute.xlu2 %622 }
 0x1a4   : > { %v628_v29 = vsel %vm504_vm1, %v623_v28, 0 }
 0x1a5   : > { %637 = vmatpush.bf16.xpose.msrb.mxu1 %v628_v29 }
 0x1ab   : > { %v679_v30 = vpop.permute.xlu2 %678 }
 0x1ac   : > { %v684_v53 = vsel %vm504_vm1, %v679_v30, 0 }
 0x1b3   : > { %v621_v31 = vpop.permute.xlu2 %620 }
 0x1b4   : > { %967 = vmatmul.msk.bf16.vlgmr.msrb.gmra.mxu1 %vm504_vm1, %v621_v31 }
 0x1c0   : > { %v520_v33 = vpop.f32.mrf.mxu2 }
 0x1c1   : > { %v521_v34 = vadd.f32 %v1072_v32, %v520_v33 }
 0x1c3   : > { %v524_v35 = vsel %vm504_vm1, %v521_v34, -inf }
 0x1c4   : > { %525 = vmax.xlane.f32.xlu0 %v524_v35 }
 0x1c8   : > { %v522_v36 = vpop.f32.mrf.mxu2 }
 0x231   : > { %v639_v37 = vpop.f32.mrf.mxu1 }
 0x232   : > { %v640_v44 = vadd.f32 %v1072_v32, %v639_v37 }
 0x234   : > { %v643_v45 = vsel %vm504_vm1, %v640_v44, -inf }
 0x237   : > { %v526_v38 = vpop.xlane.xlu0 %525 }
 0x238   : > { %v527_v39 = vsub.f32 %v521_v34, %v526_v38 }
 0x239   : > { %v641_v40 = vpop.f32.mrf.mxu1 }
 0x23a   : > { %v528_v41 = vmul.f32 1.442695, %v527_v39  ;;  %v990_v40 = vld [vmem:[#allocation7 + $0x8] sm:$0xff] }
 0x23b   : > { %779 = vmatpush.bf16.msra.mxu1 %v990_v40 }
 0x23c   : > { %1076 = vpow2.f32 %v528_v41  ;;  %v989_v41 = vld [vmem:[#allocation7] sm:$0xff] }
 0x23f   : > { %780 = vmatpush.bf16.msra.mxu1 %v989_v41 }
 0x242   : > { %v1077_v42 = vpop.eup %1076 }
 0x243   : > { %v530_v43 = vsel %vm504_vm1, %v1077_v42, 0.0 }
 0x244   : > { %531 = vadd.xlane.f32.xlu1 %v530_v43 }
 0x25d   : > { %539 = vrot.lane.b32.xlu1 %v1462_v25, %s1266_s23  ;;  %s819_s23 = sshll.u32 %s406_s13, 4  ;;  %s820_s23 = int_to_ptr.vmem [resolvable:$true] %s819_s23 }
 0x265   : > { %676 = vrot.lane.b32.xlu1 %v1462_v25, %s1265_s14 }
 0x28f   : > { %644 = vmax.xlane.f32.xlu1 %v643_v45 }
 0x2b7   : > { %v532_v46 = vpop.xlane.xlu1 %531 }
 0x2b8   : > { %1078 = vrcp.f32 %v532_v46 }
 0x2be   : > { %v1079_v47 = vpop.eup %1078 }
 0x2bf   : > { %v534_v48 = vmul.f32 %v1079_v47, %v1077_v42 }
 0x2c1   : > { %v535_v52 = vpack.c.bf16 %v534_v48, %v534_v48 }
 0x2cf   : > { %v540_v49 = vpop.permute.xlu1 %539 }
 0x2d0   : > { %v546_v50 = vsel %vm544_vm2, %v540_v49, 0  ;;  %v1075_v49 = vld [vmem:[%s1550_s8] ss:$0 sm:$0xff] }
 0x2d1   : > { %555 = vmatpush.bf16.msra.mxu3 %v546_v50 }
 0x2d4   : > { %964 = vmatmul.msk.bf16.vlgmr.msra.gmra.mxu3 %vm504_vm1, %v535_v52 }
 0x2d5   : > { %581 = vmatpush.bf16.xpose.msrb.mxu3 %v572_v51 }
 0x2d7   : > { %v677_v54 = vpop.permute.xlu1 %676 }
 0x2dd   : > { %693 = vmatpush.bf16.xpose.msra.mxu3 %v684_v53 }
 0x2e4   : > { %965 = vmatmul.msk.bf16.vlgmr.msrb.gmra.mxu3 %vm504_vm1, %v562_v27 }
 0x2f4   : > { %969 = vmatmul.msk.bf16.vlgmr.msra.gmra.mxu3 %vm504_vm1, %v677_v54 }
 0x302   : > { %v645_v56 = vpop.xlane.xlu1 %644 }
 0x303   : > { %v646_v58 = vsub.f32 %v640_v44, %v645_v56 }
 0x305   : > { %v647_v59 = vmul.f32 1.442695, %v646_v58 }
 0x307   : > { %1080 = vpow2.f32 %v647_v59 }
 0x30d   : > { %v1081_v63 = vpop.eup %1080 }
 0x30e   : > { %v649_v1 = vsel %vm504_vm1, %v1081_v63, 0.0 }
 0x357   : > { %v1485_v55 = vpop.f32.mrf.mxu3 }
 0x35f   : > { %v559_v57 = vpop.f32.mrf.mxu3 }
 0x367   : > { %v583_v60 = vpop.f32.mrf.mxu3 }
 0x368   : > { %v584_v61 = vadd.f32 %v1072_v32, %v583_v60 }
 0x36a   : > { %v587_v62 = vsel %vm504_vm1, %v584_v61, -inf }
 0x36b   : > { %588 = vmax.xlane.f32.xlu2 %v587_v62 }
 0x36f   : > { %v585_v0 = vpop.f32.mrf.mxu3 }
 0x373   : > { %650 = vadd.xlane.f32.xlu2 %v649_v1 }
 0x377   : > { %v695_v2 = vpop.f32.mrf.mxu3 }
 0x378   : > { %v696_v3 = vadd.f32 %v1072_v32, %v695_v2 }
 0x37a   : > { %v699_v4 = vsel %vm504_vm1, %v696_v3, -inf }
 0x37b   : > { %700 = vmax.xlane.f32.xlu0 %v699_v4 }
 0x37f   : > { %v697_v5 = vpop.f32.mrf.mxu3 }
 0x38b   : > { %711 = vrot.lane.b32.xlu2 %v1462_v25, %s1267_s4  ;;  %s821_s4 = sshll.u32 %s817_s15, 4  ;;  %s822_s4 = int_to_ptr.hbm [resolvable:$true] %s821_s4 }
 0x38f   : > { %599 = vrot.lane.b32.xlu0 %v1462_v25, %s1268_s27  ;;  %s1200_s27 = sshra.s32 %s822_s4, 4  ;;  %s1201_s27 = int_to_ptr.hbm [resolvable:$true] %s1200_s27 }
 0x390   : > { %p1207_p7 = scmp.lt.s32.totalorder %s1201_s27, %s1551_s9 }
 0x3de   : > { %v589_v6 = vpop.xlane.xlu2 %588 }
 0x3df   : > { %v590_v7 = vsub.f32 %v584_v61, %v589_v6 }
 0x3e1   : > { %v591_v8 = vmul.f32 1.442695, %v590_v7 }
 0x3e3   : > { %1082 = vpow2.f32 %v591_v8 }
 0x3e6   : > { %v651_v14 = vpop.xlane.xlu2 %650 }
 0x3e9   : > { %v1083_v9 = vpop.eup %1082 }
 0x3ea   : > { %v593_v10 = vsel %vm504_vm1, %v1083_v9, 0.0 }
 0x3eb   : > { %594 = vadd.xlane.f32.xlu0 %v593_v10 }
 0x3ee   : > { %v701_v11 = vpop.xlane.xlu0 %700  ;;  %v712_v17 = vpop.permute.xlu2 %711 }
 0x3ef   : > { %v702_v12 = vsub.f32 %v696_v3, %v701_v11  ;;  %v717_v20 = vsel %vm544_vm2, %v712_v17, 0 }
 0x3f1   : > { %v703_v13 = vmul.f32 1.442695, %v702_v12 }
 0x3f3   : > { %1084 = vpow2.f32 %v703_v13 }
 0x3f9   : > { %v1085_v15 = vpop.eup %1084 }
 0x3fa   : > { %v705_v16 = vsel %vm504_vm1, %v1085_v15, 0.0 }
 0x3fb   : > { %706 = vadd.xlane.f32.xlu1 %v705_v16 }
 0x3ff   : > { %655 = vrot.lane.b32.xlu0 %v1462_v25, %s1269_s24  ;;  %s1202_s24 = scalar_lea.hbm %s1201_s27, 8 }
 0x400   : > { %p1203_p1 = scmp.ne.s32.totalorder %s1201_s27, %s1202_s24 }
 0x401   : > { %v600_v18 = vpop.permute.xlu0 %599 }
 0x402   : > { %v605_v19 = vsel %vm544_vm2, %v600_v18, 0  ;;  %p1204_p5 = pnand %p1203_p1, %p1392_p4 }
 0x403   : > { %614 = vmatpush.bf16.msrb.mxu0 %v605_v19 }
 0x404   : > { %p1205_p12 = pneg %p1204_p5 }
 0x407   : > { %726 = vmatpush.bf16.msra.mxu0 %v717_v20 }
 0x45e   : > { %v595_v21 = vpop.xlane.xlu0 %594 }
 0x45f   : > { %1086 = vrcp.f32 %v595_v21 }
 0x460   : > { %1088 = vrcp.f32 %v651_v14 }
 0x465   : > { %v1087_v22 = vpop.eup %1086 }
 0x466   : > { %v597_v23 = vmul.f32 %v1087_v22, %v1083_v9  ;;  %v1089_v26 = vpop.eup %1088 }
 0x467   : > { %v653_v25 = vmul.f32 %v1089_v26, %v1081_v63 }
 0x468   : > { %v598_v24 = vpack.c.bf16 %v597_v23, %v597_v23 }
 0x469   : > { %v654_v30 = vpack.c.bf16 %v653_v25, %v653_v25 }
 0x46a   : > { %966 = vmatmul.msk.bf16.vlgmr.msrb.gmra.mxu0 %vm504_vm1, %v598_v24 }
 0x46e   : > { %v707_v27 = vpop.xlane.xlu1 %706 }
 0x46f   : > { %1090 = vrcp.f32 %v707_v27 }
 0x471   : > { %v656_v28 = vpop.permute.xlu0 %655 }
 0x472   : > { %v661_v29 = vsel %vm544_vm2, %v656_v28, 0 }
 0x473   : > { %670 = vmatpush.bf16.msrb.mxu2 %v661_v29 }
 0x475   : > { %v1091_v31 = vpop.eup %1090 }
 0x476   : > { %v709_v32 = vmul.f32 %v1091_v31, %v1085_v15  ;;  %968 = vmatmul.msk.bf16.vlgmr.msrb.gmra.mxu2 %vm504_vm1, %v654_v30 }
 0x478   : > { %v710_v33 = vpack.c.bf16 %v709_v32, %v709_v32 }
 0x47a   : > { %970 = vmatmul.msk.bf16.vlgmr.msra.gmra.mxu0 %vm504_vm1, %v710_v33 }
 0x4e7   : > { %v616_v34 = vpop.f32.mrf.mxu0 }
 0x4e8   : > { %733 = vrot.lane.b32.xlu1 %v616_v34, %s1270_s25 }
 0x4ef   : > { %v618_v35 = vpop.f32.mrf.mxu0 }
 0x4f7   : > { %v728_v36 = vpop.f32.mrf.mxu0 }
 0x4f9   : > { %v672_v37 = vpop.f32.mrf.mxu2 }
 0x4fa   : > { %737 = vrot.lane.b32.xlu0 %v672_v37, %s1271_s18 }
 0x4ff   : > { %v730_v38 = vpop.f32.mrf.mxu0 }
 0x501   : > { %v674_v39 = vpop.f32.mrf.mxu2 }
 0x502   : > { %741 = vrot.lane.b32.xlu0 %v728_v36, %s1272_s26  ;;  %s1206_s26 = scalar_lea.hbm %s1551_s9, 16 }
 0x503   : > { %p1208_p8 = scmp.lt.s32.totalorder %s1206_s26, %s1202_s24 }
 0x505   : > { %p1209_p9 = por %p1208_p8, %p1207_p7 }
 0x507   : > { %p1210_p10 = pnand %p1209_p9, %p1205_p12 }
 0x55a   : > { %v734_v43 = vpop.permute.xlu1 %733 }
 0x55b   : > { %v744_v44 = vsel %vm504_vm1, %v1485_v55, %v734_v43 }
 0x56c   : > { %v738_v42 = vpop.permute.xlu0 %737 }
 0x56d   : > { %v746_v45 = vsel %vm745_vm3, %v744_v44, %v738_v42 }
 0x574   : > { %v742_v46 = vpop.permute.xlu0 %741 }
 0x575   : > { %v748_v47 = vsel %vm747_vm4, %v746_v45, %v742_v46 }
 0x576   : > { %v749_v48 = vpack.c.bf16 %v748_v47, %v748_v47 }
 0x578   : > { %979 = vmatmul.msk.bf16.vlgmr.msra.gmra.mxu1 %vm445_vm0, %v749_v48 }
 0x5f5   : > { %v782_v50 = vpop.f32.mrf.mxu1 }
 0x5f6   : > { %v783_v51 = vadd.f32 %v1075_v49, %v782_v50 }
 0x5f8   : > { %v980_v52 = vmul.f32 -1.442695, %v783_v51 }
 0x5fa   : > { %1092 = vpow2.f32 %v980_v52 }
 0x5fd   : > { %v784_v53 = vpop.f32.mrf.mxu1 }
 0x600   : > { %v1093_v54 = vpop.eup %1092 }
 0x601   : > { %v789_v56 = vadd.f32 1.0, %v1093_v54 }
 0x603   : > { %1094 = vrcp.f32 %v789_v56  ;;  %v801_v59 = vand.u32 2147483648, %v789_v56  ;;  %v799_v61 = vand.u32 2147483647, %v789_v56  ;;  %vm795_vm6 = vweird.f32 %v789_v56 }
 0x605   : > { %v802_v63 = vor.u32 1.1754944e-38, %v801_v59  ;;  %vm800_vm8 = vcmp.eq.f32.partialorder %v799_v61, 8.507059e+37 }
 0x609   : > { %v1095_v55 = vpop.eup %1094 }
 0x60a   : > { %v791_v57 = vmul.f32 %v1095_v55, %v789_v56  ;;  %vm796_vm5 = vweird.f32 %v1095_v55 }
 0x60b   : > { %vm797_vm7 = vmor %vm795_vm6, %vm796_vm5 }
 0x60c   : > { %v792_v58 = vsub.f32 1.0, %v791_v57 }
 0x60e   : > { %v793_v60 = vmul.f32 %v1095_v55, %v792_v58 }
 0x610   : > { %v794_v62 = vadd.f32 %v1095_v55, %v793_v60 }
 0x612   : > { %v798_v0 = vsel %vm797_vm7, %v1095_v55, %v794_v62 }
 0x613   : > { %v803_v1 = vsel %vm800_vm8, %v802_v63, %v798_v0 }
 0x614   : > { %805 = vst.msk [vmem:[%s406_s13] sm:$0xff] %vm445_vm0, %v803_v1 }
 0x615   : > { %1213 = shalt.err (!%p1210_p10)
}
 0x616   : > { %1001 = dma.vmem_to_hbm [thread:$0]  (%p1392_p4), %s820_s23, 128, %s822_s4, %s807_s16  }
 0x617 PF: > { %s833_s19 = sand.u32 1, %s1244_s30   ;;  %p1565_p13 = scmp.ge.s32.totalorder %s1256_s12, 2 }
 0x618   : > { %s834_s11 = scalar_lea.sflag [#allocation4], %s833_s19 }
 0x619   : > { %p1015_p11 = pnand %p1565_p13, %p1396_p6 }
 0x61b   : > { %p1016_p0 = pneg %p1015_p11 }
 0x61d   : > { %1239 = dma.done.wait (%p1016_p0), %s834_s11, 128  }
 0x61e   : > { %1241 = vsyncadd (%p1016_p0), %s834_s11, 4294967168  ;;  %s1566_s22 = sld [smem:[#allocation12_spill]]  ;;  %p23_p2 = scmp.ge.s32.totalorder %s1366_s28, 4  }
 0x61f   : > { %s1567_s11 = sld [smem:[#allocation13_spill]]  ;;  %s1568_s30 = smov %s1248_s10 }
 0x620   : > { %s1570_s12 = smov %s1366_s28  ;;  %25 = sbr.rel (!%p23_p2) target bundleno = 9 (0x9), region = 115 }
 0x624   : > { %s1569_s10 = smov %s1566_s22 }
 0x625   :  { %840 = vsyncpa [#allocation3], 1 }
 0x626   :  { %842 = vsyncpa [#allocation3 + $0x1], 1 }
 0x627   :  { %843 = vsyncpa [#allocation6], 1 }
 0x628   :  { %844 = vsyncpa [#allocation4], 1 }
 0x629   :  { %846 = vsyncpa [#allocation4 + $0x1], 1 }

</bundles_post_ra>
